<compile_context>
chip_gen: v7x
topology: tpu7x:2x2x1
jax: 0.10.0
libtpu: 0.0.40
codegen_flags: <defaults>
</compile_context>

<pallas_src>
import jax
import jax.numpy as jnp
from jax import lax
from jax.experimental import pallas as pl
from jax.experimental.pallas import tpu as pltpu

BN_EPS = 1e-5


def netwrapper_kernel(x_ref, wenc_ref, benc_ref, w1_ref, g1_ref, b1_ref, w2_ref,
                      proj_ref, rep_ref, acc_ref):
    """K-tiled backbone-linear + fused BYOL projector.

    Grid: (IN // TK,) over the encoder contraction axis ("arbitrary" / reduction).

    x_ref    : (B, TK)      bf16   flattened NCHW input, K-tile
    wenc_ref : (TK, BB)     bf16   synthetic backbone encoder weight tile (in, out)
    benc_ref : (1, BB)      f32    synthetic backbone encoder bias
    w1_ref   : (BB, PREVP)  bf16   projector Linear1 weight (in, out), no bias (lane-padded)
    g1_ref   : (1, PREVP)   f32    BatchNorm1d(prev) gamma (lane-padded with 0)
    b1_ref   : (1, PREVP)   f32    BatchNorm1d(prev) beta  (lane-padded with 0)
    w2_ref   : (PREVP, DIMP) bf16  projector Linear2 weight (in, out), no bias (lane-padded)
    proj_ref : (B, DIMP)    f32    output projection (lane-padded; valid cols sliced outside)
    rep_ref  : (B, BB)      f32    output representation (hooked, flattened hidden)
    acc_ref  : (B, BB)      f32    VMEM scratch accumulator for the encoder matmul
    """
    k = pl.program_id(0)

    @pl.when(k == 0)
    def _():
        acc_ref[...] = jnp.zeros_like(acc_ref)

    # --- backbone hidden layer: K-tiled bf16 matmul, f32 accumulation on the MXU ---
    acc_ref[...] += jnp.dot(x_ref[...], wenc_ref[...],
                            preferred_element_type=jnp.float32)

    @pl.when(k == pl.num_programs(0) - 1)
    def _():
        # finalize representation (the forward-hooked hidden, already flattened)
        rep = acc_ref[...] + benc_ref[...]
        rep_ref[...] = rep

        inv_b = 1.0 / rep.shape[0]

        # --- BYOL projector ---
        # Linear(bb_dim, prev_dim, bias=False)  -- bf16 operands, f32 accumulation
        h = jnp.dot(rep.astype(jnp.bfloat16), w1_ref[...],
                    preferred_element_type=jnp.float32)

        # BatchNorm1d(prev_dim), train mode: biased batch stats, fused single pass
        s1 = jnp.sum(h, axis=0, keepdims=True)
        s2 = jnp.sum(h * h, axis=0, keepdims=True)
        mu1 = s1 * inv_b
        var1 = jnp.maximum(s2 * inv_b - mu1 * mu1, 0.0)
        h = (h - mu1) * lax.rsqrt(var1 + BN_EPS) * g1_ref[...] + b1_ref[...]

        # ReLU
        h = jnp.maximum(h, 0.0)

        # Linear(prev_dim, dim, bias=False)
        z = jnp.dot(h.astype(jnp.bfloat16), w2_ref[...],
                    preferred_element_type=jnp.float32)

        # BatchNorm1d(dim, affine=False), train mode
        t1 = jnp.sum(z, axis=0, keepdims=True)
        t2 = jnp.sum(z * z, axis=0, keepdims=True)
        mu2 = t1 * inv_b
        var2 = jnp.maximum(t2 * inv_b - mu2 * mu2, 0.0)
        proj_ref[...] = (z - mu2) * lax.rsqrt(var2 + BN_EPS)


def _pad_cols(a, total):
    pad = total - a.shape[1]
    if pad == 0:
        return a
    return jnp.pad(a, ((0, 0), (0, pad)))


def netwrapper_forward(x_nchw, params, *, tk=512):
    """x_nchw: (B, C, H, W) float32. Returns (projection, representation)."""
    B = x_nchw.shape[0]
    x_flat = x_nchw.reshape(B, -1).astype(jnp.bfloat16)

    w_enc, b_enc, w1, g1, b1, w2 = params
    IN, BB = w_enc.shape
    PREV = w1.shape[1]
    DIM = w2.shape[1]
    assert x_flat.shape[1] == IN

    # K-tile size for the encoder contraction axis (lane-aligned).
    tk = min(tk, IN)
    assert IN % tk == 0 and tk % 128 == 0

    # Lane-dense padding of the small projector dims (64 -> 128, 32 -> 128).
    LANE = 128
    PREVP = max(LANE, ((PREV + LANE - 1) // LANE) * LANE)
    DIMP = max(LANE, ((DIM + LANE - 1) // LANE) * LANE)

    w_enc_bf = w_enc.astype(jnp.bfloat16)
    w1_p = _pad_cols(w1, PREVP).astype(jnp.bfloat16)                       # (BB, PREVP)
    g1_p = _pad_cols(g1, PREVP)                                            # (1, PREVP)
    b1_p = _pad_cols(b1, PREVP)                                            # (1, PREVP)
    w2_p = jnp.pad(w2, ((0, PREVP - PREV), (0, DIMP - DIM))).astype(jnp.bfloat16)

    flops = 2 * B * (IN * BB + BB * PREVP + PREVP * DIMP)
    bytes_accessed = (x_flat.size * 2 + w_enc_bf.size * 2 + b_enc.size * 4 +
                      w1_p.size * 2 + g1_p.size * 4 + b1_p.size * 4 + w2_p.size * 2 +
                      B * DIMP * 4 + B * BB * 4)

    grid = (IN // tk,)
    proj_p, rep = pl.pallas_call(
        netwrapper_kernel,
        out_shape=(jax.ShapeDtypeStruct((B, DIMP), jnp.float32),
                   jax.ShapeDtypeStruct((B, BB), jnp.float32)),
        grid_spec=pltpu.PrefetchScalarGridSpec(
            num_scalar_prefetch=0,
            grid=grid,
            in_specs=[
                pl.BlockSpec((B, tk), lambda k: (0, k)),        # x: K-tiled
                pl.BlockSpec((tk, BB), lambda k: (k, 0)),       # w_enc: K-tiled
                pl.BlockSpec((1, BB), lambda k: (0, 0)),        # b_enc
                pl.BlockSpec((BB, PREVP), lambda k: (0, 0)),    # w1
                pl.BlockSpec((1, PREVP), lambda k: (0, 0)),     # gamma1
                pl.BlockSpec((1, PREVP), lambda k: (0, 0)),     # beta1
                pl.BlockSpec((PREVP, DIMP), lambda k: (0, 0)),  # w2
            ],
            out_specs=(pl.BlockSpec((B, DIMP), lambda k: (0, 0)),
                       pl.BlockSpec((B, BB), lambda k: (0, 0))),
            scratch_shapes=[pltpu.VMEM((B, BB), jnp.float32)],
        ),
        compiler_params=pltpu.CompilerParams(
            # K is a reduction axis (output resident across it).
            # TODO(synk): add a BN-independent parallel axis for v7x megacore.
            dimension_semantics=("arbitrary",),
            vmem_limit_bytes=32 * 1024 * 1024,
        ),
        cost_estimate=pl.CostEstimate(flops=flops, transcendentals=0,
                                      bytes_accessed=bytes_accessed),
    )(x_flat, w_enc_bf, b_enc, w1_p, g1_p, b1_p, w2_p)

    # Slice off the lane-padding (padded BN columns are exactly 0 but not meaningful).
    return proj_p[:, :DIM], rep


def init_params(key, in_dim, bb_dim, prev_dim, dim):
    """Deterministic synthetic weights (PyTorch stores Linear weight as (out,in);
    we generate (out,in) then transpose to (in,out) for lane-dense kernel matmuls)."""
    k0, k1, k2, k3 = jax.random.split(key, 4)
    w_enc = (jax.random.normal(k0, (bb_dim, in_dim), jnp.float32) / jnp.sqrt(in_dim)).T
    b_enc = (jax.random.normal(k1, (1, bb_dim), jnp.float32) * 0.01)
    w1 = (jax.random.normal(k2, (prev_dim, bb_dim), jnp.float32) / jnp.sqrt(bb_dim)).T
    g1 = jnp.ones((1, prev_dim), jnp.float32)   # BatchNorm1d default gamma
    b1 = jnp.zeros((1, prev_dim), jnp.float32)  # BatchNorm1d default beta
    w2 = (jax.random.normal(k3, (dim, prev_dim), jnp.float32) / jnp.sqrt(prev_dim)).T
    return (w_enc, b_enc, w1, g1, b1, w2)


def reference_forward(x_nchw, params):
    """Pure-JAX f32 reference for correctness check."""
    w_enc, b_enc, w1, g1, b1, w2 = params
    B = x_nchw.shape[0]
    x = x_nchw.reshape(B, -1).astype(jnp.float32)
    rep = x @ w_enc + b_enc
    h = rep @ w1
    mu1 = h.mean(0, keepdims=True)
    var1 = ((h - mu1) ** 2).mean(0, keepdims=True)
    h = (h - mu1) / jnp.sqrt(var1 + BN_EPS) * g1 + b1
    h = jnp.maximum(h, 0.0)
    z = h @ w2
    mu2 = z.mean(0, keepdims=True)
    var2 = ((z - mu2) ** 2).mean(0, keepdims=True)
    proj = (z - mu2) / jnp.sqrt(var2 + BN_EPS)
    return proj, rep


if __name__ == "__main__":
    # Small shapes consistent with the module:
    #   x: (B, C, H, W) NCHW; bb_dim = flattened hooked-layer width
    #   projection_hidden_size (prev_dim), projection_size (dim)
    B, C, H, W = 8, 4, 16, 16
    IN_DIM = C * H * W        # 1024
    BB_DIM = 128              # hooked hidden layer width (flattened)
    PREV_DIM = 64             # projection_hidden_size
    DIM = 32                  # projection_size

    key = jax.random.PRNGKey(0)
    kx, kp = jax.random.split(key)
    x = jax.random.normal(kx, (B, C, H, W), jnp.float32)
    params = init_params(kp, IN_DIM, BB_DIM, PREV_DIM, DIM)

    proj, rep = netwrapper_forward(x, params)
    jax.block_until_ready((proj, rep))

    proj_ref, rep_ref = reference_forward(x, params)
    assert proj.shape == (B, DIM) and rep.shape == (B, BB_DIM)
    # bf16 matmul operands (f32 accumulation) -> loosen tolerance vs f32 reference.
    assert jnp.allclose(rep, rep_ref, atol=5e-2, rtol=5e-2)
    assert jnp.allclose(proj, proj_ref, atol=5e-2, rtol=5e-2)

    # TODO(synk): the injected backbone `net` is arbitrary in the original module; a
    # deterministic synthetic linear encoder stands in for the forward-hooked layer.
    # TODO(synk): BatchNorm running_mean/running_var momentum updates (train-mode buffer
    # state) are not reproduced; only the forward outputs.
    print("KERNEL_OK")
</pallas_src>

<mosaic_0001>
module attributes {stable_mosaic.version = 11 : i64} {
  func.func @netwrapper_kernel(%arg0: i32, %arg1: memref<8x512xbf16, #tpu.memory_space<vmem>>, %arg2: memref<512x128xbf16, #tpu.memory_space<vmem>>, %arg3: memref<1x128xf32, #tpu.memory_space<vmem>>, %arg4: memref<128x128xbf16, #tpu.memory_space<vmem>>, %arg5: memref<1x128xf32, #tpu.memory_space<vmem>>, %arg6: memref<1x128xf32, #tpu.memory_space<vmem>>, %arg7: memref<128x128xbf16, #tpu.memory_space<vmem>>, %arg8: memref<8x128xf32, #tpu.memory_space<vmem>>, %arg9: memref<8x128xf32, #tpu.memory_space<vmem>>, %arg10: memref<8x128xf32, #tpu.memory_space<vmem>>) attributes {dimension_semantics = [#tpu.dimension_semantics<arbitrary>], iteration_bounds = array<i64: 2>, scalar_prefetch = 0 : i64, scratch_operands = 1 : i64, tpu.core_type = #tpu.core_type<tc>, window_params = [{transform_indices = @transform_0, window_bounds = array<i64: 8, 512>}, {transform_indices = @transform_1, window_bounds = array<i64: 512, 128>}, {pipeline_mode = #tpu.pipeline_mode<synchronous>, transform_indices = @transform_2, window_bounds = array<i64: 1, 128>}, {pipeline_mode = #tpu.pipeline_mode<synchronous>, transform_indices = @transform_3, window_bounds = array<i64: 128, 128>}, {pipeline_mode = #tpu.pipeline_mode<synchronous>, transform_indices = @transform_4, window_bounds = array<i64: 1, 128>}, {pipeline_mode = #tpu.pipeline_mode<synchronous>, transform_indices = @transform_5, window_bounds = array<i64: 1, 128>}, {pipeline_mode = #tpu.pipeline_mode<synchronous>, transform_indices = @transform_6, window_bounds = array<i64: 128, 128>}, {pipeline_mode = #tpu.pipeline_mode<synchronous>, transform_indices = @transform_7, window_bounds = array<i64: 8, 128>}, {pipeline_mode = #tpu.pipeline_mode<synchronous>, transform_indices = @transform_8, window_bounds = array<i64: 8, 128>}]} {
    %c0_i32 = arith.constant 0 : i32
    %0 = arith.cmpi eq, %arg0, %c0_i32 : i32
    %1 = arith.extui %0 : i1 to i32
    %c0_i32_0 = arith.constant 0 : i32
    %2 = arith.cmpi ne, %1, %c0_i32_0 : i32
    scf.if %2 {
      %cst_9 = arith.constant 0.000000e+00 : f32
      %12 = vector.broadcast %cst_9 : f32 to vector<8x128xf32>
      %c0_10 = arith.constant 0 : index
      %c0_11 = arith.constant 0 : index
      %13 = vector.load %arg10[%c0_10, %c0_11] : memref<8x128xf32, #tpu.memory_space<vmem>>, vector<8x128xf32>
      tpu.vector_store %arg10[%c0_10, %c0_11], %12 {strides = array<i32>} : memref<8x128xf32, #tpu.memory_space<vmem>>, vector<8x128xf32>,
    } else {
    }
    %c0 = arith.constant 0 : index
    %c0_1 = arith.constant 0 : index
    %3 = vector.load %arg10[%c0, %c0_1] : memref<8x128xf32, #tpu.memory_space<vmem>>, vector<8x128xf32>
    %c0_2 = arith.constant 0 : index
    %c0_3 = arith.constant 0 : index
    %4 = vector.load %arg1[%c0_2, %c0_3] : memref<8x512xbf16, #tpu.memory_space<vmem>>, vector<8x512xbf16>
    %c0_4 = arith.constant 0 : index
    %c0_5 = arith.constant 0 : index
    %5 = vector.load %arg2[%c0_4, %c0_5] : memref<512x128xbf16, #tpu.memory_space<vmem>>, vector<512x128xbf16>
    %cst = arith.constant dense<0.000000e+00> : vector<8x128xf32>
    %6 = tpu.matmul %4, %5, %cst {dimension_numbers = #tpu.dot_dimension_numbers<[1], [0], [0], [1], [0, 0, 1, 1], [], []>} : vector<8x512xbf16>, vector<512x128xbf16>, vector<8x128xf32> -> vector<8x128xf32>
    %7 = arith.addf %3, %6 : vector<8x128xf32>
    %c0_6 = arith.constant 0 : index
    %c0_7 = arith.constant 0 : index
    %8 = vector.load %arg10[%c0_6, %c0_7] : memref<8x128xf32, #tpu.memory_space<vmem>>, vector<8x128xf32>
    tpu.vector_store %arg10[%c0_6, %c0_7], %7 {strides = array<i32>} : memref<8x128xf32, #tpu.memory_space<vmem>>, vector<8x128xf32>,
    %c1_i32 = arith.constant 1 : i32
    %9 = arith.cmpi eq, %arg0, %c1_i32 : i32
    %10 = arith.extui %9 : i1 to i32
    %c0_i32_8 = arith.constant 0 : i32
    %11 = arith.cmpi ne, %10, %c0_i32_8 : i32
    scf.if %11 {
      %c0_9 = arith.constant 0 : index
      %c0_10 = arith.constant 0 : index
      %12 = vector.load %arg10[%c0_9, %c0_10] : memref<8x128xf32, #tpu.memory_space<vmem>>, vector<8x128xf32>
      %c0_11 = arith.constant 0 : index
      %c0_12 = arith.constant 0 : index
      %13 = vector.load %arg3[%c0_11, %c0_12] : memref<1x128xf32, #tpu.memory_space<vmem>>, vector<1x128xf32>
      %14 = vector.broadcast %13 : vector<1x128xf32> to vector<8x128xf32>
      %15 = arith.addf %12, %14 : vector<8x128xf32>
      %c0_13 = arith.constant 0 : index
      %c0_14 = arith.constant 0 : index
      %16 = vector.load %arg9[%c0_13, %c0_14] : memref<8x128xf32, #tpu.memory_space<vmem>>, vector<8x128xf32>
      tpu.vector_store %arg9[%c0_13, %c0_14], %15 {strides = array<i32>} : memref<8x128xf32, #tpu.memory_space<vmem>>, vector<8x128xf32>,
      %17 = arith.truncf %15 : vector<8x128xf32> to vector<8x128xbf16>
      %c0_15 = arith.constant 0 : index
      %c0_16 = arith.constant 0 : index
      %18 = vector.load %arg4[%c0_15, %c0_16] : memref<128x128xbf16, #tpu.memory_space<vmem>>, vector<128x128xbf16>
      %cst_17 = arith.constant dense<0.000000e+00> : vector<8x128xf32>
      %19 = tpu.matmul %17, %18, %cst_17 {dimension_numbers = #tpu.dot_dimension_numbers<[1], [0], [0], [1], [0, 0, 1, 1], [], []>} : vector<8x128xbf16>, vector<128x128xbf16>, vector<8x128xf32> -> vector<8x128xf32>
      %cst_18 = arith.constant dense<0.000000e+00> : vector<128xf32>
      %20 = vector.multi_reduction <add>, %19, %cst_18 [0] : vector<8x128xf32> to vector<128xf32>
      %21 = vector.shape_cast %20 : vector<128xf32> to vector<1x128xf32>
      %22 = arith.mulf %19, %19 : vector<8x128xf32>
      %cst_19 = arith.constant dense<0.000000e+00> : vector<128xf32>
      %23 = vector.multi_reduction <add>, %22, %cst_19 [0] : vector<8x128xf32> to vector<128xf32>
      %24 = vector.shape_cast %23 : vector<128xf32> to vector<1x128xf32>
      %cst_20 = arith.constant 1.250000e-01 : f32
      %25 = vector.broadcast %cst_20 : f32 to vector<1x128xf32>
      %26 = arith.mulf %21, %25 : vector<1x128xf32>
      %cst_21 = arith.constant 1.250000e-01 : f32
      %27 = vector.broadcast %cst_21 : f32 to vector<1x128xf32>
      %28 = arith.mulf %24, %27 : vector<1x128xf32>
      %29 = arith.mulf %26, %26 : vector<1x128xf32>
      %30 = arith.subf %28, %29 : vector<1x128xf32>
      %cst_22 = arith.constant 0.000000e+00 : f32
      %31 = vector.broadcast %cst_22 : f32 to vector<1x128xf32>
      %32 = arith.maximumf %30, %31 : vector<1x128xf32>
      %33 = vector.broadcast %26 : vector<1x128xf32> to vector<8x128xf32>
      %34 = arith.subf %19, %33 : vector<8x128xf32>
      %cst_23 = arith.constant 9.99999974E-6 : f32
      %35 = vector.broadcast %cst_23 : f32 to vector<1x128xf32>
      %36 = arith.addf %32, %35 : vector<1x128xf32>
      %37 = math.rsqrt %36 : vector<1x128xf32>
      %38 = vector.broadcast %37 : vector<1x128xf32> to vector<8x128xf32>
      %39 = arith.mulf %34, %38 : vector<8x128xf32>
      %c0_24 = arith.constant 0 : index
      %c0_25 = arith.constant 0 : index
      %40 = vector.load %arg5[%c0_24, %c0_25] : memref<1x128xf32, #tpu.memory_space<vmem>>, vector<1x128xf32>
      %41 = vector.broadcast %40 : vector<1x128xf32> to vector<8x128xf32>
      %42 = arith.mulf %39, %41 : vector<8x128xf32>
      %c0_26 = arith.constant 0 : index
      %c0_27 = arith.constant 0 : index
      %43 = vector.load %arg6[%c0_26, %c0_27] : memref<1x128xf32, #tpu.memory_space<vmem>>, vector<1x128xf32>
      %44 = vector.broadcast %43 : vector<1x128xf32> to vector<8x128xf32>
      %45 = arith.addf %42, %44 : vector<8x128xf32>
      %cst_28 = arith.constant 0.000000e+00 : f32
      %46 = vector.broadcast %cst_28 : f32 to vector<8x128xf32>
      %47 = arith.maximumf %45, %46 : vector<8x128xf32>
      %48 = arith.truncf %47 : vector<8x128xf32> to vector<8x128xbf16>
      %c0_29 = arith.constant 0 : index
      %c0_30 = arith.constant 0 : index
      %49 = vector.load %arg7[%c0_29, %c0_30] : memref<128x128xbf16, #tpu.memory_space<vmem>>, vector<128x128xbf16>
      %cst_31 = arith.constant dense<0.000000e+00> : vector<8x128xf32>
      %50 = tpu.matmul %48, %49, %cst_31 {dimension_numbers = #tpu.dot_dimension_numbers<[1], [0], [0], [1], [0, 0, 1, 1], [], []>} : vector<8x128xbf16>, vector<128x128xbf16>, vector<8x128xf32> -> vector<8x128xf32>
      %cst_32 = arith.constant dense<0.000000e+00> : vector<128xf32>
      %51 = vector.multi_reduction <add>, %50, %cst_32 [0] : vector<8x128xf32> to vector<128xf32>
      %52 = vector.shape_cast %51 : vector<128xf32> to vector<1x128xf32>
      %53 = arith.mulf %50, %50 : vector<8x128xf32>
      %cst_33 = arith.constant dense<0.000000e+00> : vector<128xf32>
      %54 = vector.multi_reduction <add>, %53, %cst_33 [0] : vector<8x128xf32> to vector<128xf32>
      %55 = vector.shape_cast %54 : vector<128xf32> to vector<1x128xf32>
      %cst_34 = arith.constant 1.250000e-01 : f32
      %56 = vector.broadcast %cst_34 : f32 to vector<1x128xf32>
      %57 = arith.mulf %52, %56 : vector<1x128xf32>
      %cst_35 = arith.constant 1.250000e-01 : f32
      %58 = vector.broadcast %cst_35 : f32 to vector<1x128xf32>
      %59 = arith.mulf %55, %58 : vector<1x128xf32>
      %60 = arith.mulf %57, %57 : vector<1x128xf32>
      %61 = arith.subf %59, %60 : vector<1x128xf32>
      %cst_36 = arith.constant 0.000000e+00 : f32
      %62 = vector.broadcast %cst_36 : f32 to vector<1x128xf32>
      %63 = arith.maximumf %61, %62 : vector<1x128xf32>
      %64 = vector.broadcast %57 : vector<1x128xf32> to vector<8x128xf32>
      %65 = arith.subf %50, %64 : vector<8x128xf32>
      %cst_37 = arith.constant 9.99999974E-6 : f32
      %66 = vector.broadcast %cst_37 : f32 to vector<1x128xf32>
      %67 = arith.addf %63, %66 : vector<1x128xf32>
      %68 = math.rsqrt %67 : vector<1x128xf32>
      %69 = vector.broadcast %68 : vector<1x128xf32> to vector<8x128xf32>
      %70 = arith.mulf %65, %69 : vector<8x128xf32>
      %c0_38 = arith.constant 0 : index
      %c0_39 = arith.constant 0 : index
      %71 = vector.load %arg8[%c0_38, %c0_39] : memref<8x128xf32, #tpu.memory_space<vmem>>, vector<8x128xf32>
      tpu.vector_store %arg8[%c0_38, %c0_39], %70 {strides = array<i32>} : memref<8x128xf32, #tpu.memory_space<vmem>>, vector<8x128xf32>,
    } else {
    }
    return
  }
  func.func @transform_0(%arg0: i32) -> (i32, i32) {
    %c0_i32 = arith.constant 0 : i32
    %c0_i32_0 = arith.constant 0 : i32
    return %c0_i32, %arg0 : i32, i32
  }
  func.func @transform_1(%arg0: i32) -> (i32, i32) {
    %c0_i32 = arith.constant 0 : i32
    %c0_i32_0 = arith.constant 0 : i32
    return %arg0, %c0_i32 : i32, i32
  }
  func.func @transform_2(%arg0: i32) -> (i32, i32) {
    %c0_i32 = arith.constant 0 : i32
    %c0_i32_0 = arith.constant 0 : i32
    %c0_i32_1 = arith.constant 0 : i32
    return %c0_i32, %c0_i32_0 : i32, i32
  }
  func.func @transform_3(%arg0: i32) -> (i32, i32) {
    %c0_i32 = arith.constant 0 : i32
    %c0_i32_0 = arith.constant 0 : i32
    %c0_i32_1 = arith.constant 0 : i32
    return %c0_i32, %c0_i32_0 : i32, i32
  }
  func.func @transform_4(%arg0: i32) -> (i32, i32) {
    %c0_i32 = arith.constant 0 : i32
    %c0_i32_0 = arith.constant 0 : i32
    %c0_i32_1 = arith.constant 0 : i32
    return %c0_i32, %c0_i32_0 : i32, i32
  }
  func.func @transform_5(%arg0: i32) -> (i32, i32) {
    %c0_i32 = arith.constant 0 : i32
    %c0_i32_0 = arith.constant 0 : i32
    %c0_i32_1 = arith.constant 0 : i32
    return %c0_i32, %c0_i32_0 : i32, i32
  }
  func.func @transform_6(%arg0: i32) -> (i32, i32) {
    %c0_i32 = arith.constant 0 : i32
    %c0_i32_0 = arith.constant 0 : i32
    %c0_i32_1 = arith.constant 0 : i32
    return %c0_i32, %c0_i32_0 : i32, i32
  }
  func.func @transform_7(%arg0: i32) -> (i32, i32) {
    %c0_i32 = arith.constant 0 : i32
    %c0_i32_0 = arith.constant 0 : i32
    %c0_i32_1 = arith.constant 0 : i32
    return %c0_i32, %c0_i32_0 : i32, i32
  }
  func.func @transform_8(%arg0: i32) -> (i32, i32) {
    %c0_i32 = arith.constant 0 : i32
    %c0_i32_0 = arith.constant 0 : i32
    %c0_i32_1 = arith.constant 0 : i32
    return %c0_i32, %c0_i32_0 : i32, i32
  }
}

</mosaic_0001>

<bundles_post_ra>
// kernel: tpu_custom_call.1
= control target key start
LH: loop header
LB: loop body
LE: loop exit
PB: predicated region body
PF: predicated region fallthrough
CT: control target
= control target key end

     0   :  { %s2074_s0 = inlined_call_operand.hbm [shape: bf16[8,1024], index: 0, kind: input, shape index: {}]   ;;  %s2075_s1 = inlined_call_operand.hbm [shape: bf16[1024,128], index: 1, kind: input, shape index: {}]   ;;  %s2076_s2 = inlined_call_operand.vmem [shape: f32[1,128], index: 2, kind: input, shape index: {}]   ;;  %s2077_s3 = inlined_call_operand.hbm [shape: bf16[128,128], index: 3, kind: input, shape index: {}]   ;;  %s2078_s4 = inlined_call_operand.vmem [shape: f32[1,128], index: 4, kind: input, shape index: {}]   ;;  %s2079_s5 = inlined_call_operand.vmem [shape: f32[1,128], index: 5, kind: input, shape index: {}]   ;;  %s2080_s6 = inlined_call_operand.hbm [shape: bf16[128,128], index: 6, kind: input, shape index: {}]   ;;  %s2081_s7 = inlined_call_operand.hbm [shape: f32[8,128], index: 7, kind: output, shape index: {0}]   ;;  %s2082_s8 = inlined_call_operand.hbm [shape: f32[8,128], index: 8, kind: output, shape index: {1}]  }
   0x1   :  { %2088 = sst [smem:[#allocation20_spill]] %s2074_s0 }
   0x2   :  { %14 = vsyncpa [#allocation4], 0 }
   0x3   :  { %16 = vsyncpa [#allocation4 + $0x1], 0 }
   0x4   :  { %17 = vsyncpa [#allocation7], 0 }
   0x5   :  { %19 = vsyncpa [#allocation7 + $0x1], 0 }
   0x6   :  { %20 = vsyncpa [#allocation10], 0 }
   0x7   :  { %21 = vsyncpa [#allocation5], 0 }
   0x8   :  { %22 = vsyncpa [#allocation13], 0  ;;  %s1751_s27 = smov 0   ;;  %s1753_s28 = smov 0  }
   0x9   :  { %s1755_s29 = smov 0   ;;  %s1757_s30 = smov 0  }
   0xa LB: > { %s1770_s9 = sadd.s32 4294967295, %s1693_s30   ;;  %p48_p0 = scmp.ne.s32.totalorder %s1685_s28, %s1681_s27  ;;  %s1693_s30 = sphi %s1757_s30, %s2103_s30   ;;  %s1689_s29 = sphi %s1755_s29, %s2106_s29   ;;  %s1685_s28 = sphi %s1753_s28, %s2105_s28   ;;  %s1681_s27 = sphi %s1751_s27, %s2104_s27  }
   0xb   : > { %p2083_p1 = scmp.eq.s32.totalorder %s1770_s9, 0  ;;  %p1149_p2 = scmp.ge.s32.totalorder %s1693_s30, 1 }
   0xc   : > { %p232_p3 = scmp.lt.s32.totalorder %s1693_s30, 3  ;;  %s1695_s12 = smov [#allocation8]  }
   0xd   : > { %p1779_p5 = por %p2083_p1, %p48_p0  ;;  %s247_s13 = sshll.u32 %s1695_s12, 4  ;;  %s248_s13 = int_to_ptr.vmem [resolvable:$true] %s247_s13 }
   0xe   : > { %p1783_p6 = pnand %p1149_p2, %p232_p3  ;;  %s1696_s15 = smov [#allocation9]  }
   0xf   : > { %s2089_s10 = scalar_select %p1779_p5, 1, 0 }
  0x10   : > { %s2090_s11 = scalar_select %p1783_p6, 1, 0 }
  0x11   : > { %p1351_p7 = pneg %p1783_p6  ;;  %s266_s16 = sshll.u32 %s1696_s15, 4  ;;  %s1795_s16 = int_to_ptr.vmem [resolvable:$true] %s266_s16 }
  0x12   : > { %s1471_s19 = scalar_lea.hbm %s2077_s3, 1024 }
  0x13   : > { %p1791_p8 = pnand %p1351_p7, %p2083_p1  ;;  %p1472_p9 = scmp.ne.s32.totalorder %s2077_s3, %s1471_s19 }
  0x14   : > { %p1478_p13 = scmp.lt.u32.totalorder %s1471_s19, %s2077_s3 }
  0x15   : > { %p1473_p10 = pneg %p1791_p8 }
  0x17   : > { %p1474_p11 = pnand %p1473_p10, %p1472_p9 }
  0x19   : > { %p1475_p12 = pneg %p1474_p11 }
  0x1b   : > { %p1480_p0 = pnand %p1478_p13, %p1475_p12 }
  0x1d   : > { %1483 = shalt.err (!%p1480_p0)
}
  0x1e   : > { %s1484_s24 = scalar_lea.vmem %s248_s13, 1024  ;;  %p1492_p4 = scmp.lt.s32.totalorder %s248_s13, %s248_s13 }
  0x1f   : > { %p1485_p2 = scmp.ne.s32.totalorder %s248_s13, %s1484_s24  ;;  %p1493_p1 = scmp.lt.s32.totalorder %s1484_s24, %s1484_s24 }
  0x21   : > { %p1487_p3 = pnand %p1485_p2, %p1473_p10  ;;  %p1494_p5 = por %p1493_p1, %p1492_p4 }
  0x23   : > { %p1488_p7 = pneg %p1487_p3 }
  0x25   : > { %p1495_p6 = pnand %p1494_p5, %p1488_p7 }
  0x27   : > { %1498 = shalt.err (!%p1495_p6)
}
  0x28   : > { %s2086_s25 = smov 64   ;;  %s2087_s26 = smov 4  }
  0x29   : > { %1354 = dma.hbm_to_vmem [thread:$0]  (!%p1791_p8), %s2077_s3, 1024, %s248_s13, [#allocation7], %s2086_s25, %s2086_s25, %s2087_s26  }
  0x2a   : > { %s1499_s18 = scalar_lea.hbm %s2080_s6, 1024 }
  0x2b   : > { %p1500_p1 = scmp.ne.s32.totalorder %s2080_s6, %s1499_s18  ;;  %p1506_p6 = scmp.lt.u32.totalorder %s1499_s18, %s2080_s6 }
  0x2d   : > { %p1502_p4 = pnand %p1500_p1, %p1473_p10 }
  0x2f   : > { %p1503_p5 = pneg %p1502_p4 }
  0x31   : > { %p1508_p9 = pnand %p1506_p6, %p1503_p5 }
  0x33   : > { %1511 = shalt.err (!%p1508_p9)
}
  0x34   : > { %s1512_s13 = scalar_lea.vmem %s1795_s16, 1024  ;;  %p1520_p0 = scmp.lt.s32.totalorder %s1795_s16, %s1795_s16 }
  0x35   : > { %p1513_p11 = scmp.ne.s32.totalorder %s1795_s16, %s1512_s13  ;;  %p1521_p2 = scmp.lt.s32.totalorder %s1512_s13, %s1512_s13 }
  0x37   : > { %p1515_p12 = pnand %p1513_p11, %p1473_p10  ;;  %p1522_p3 = por %p1521_p2, %p1520_p0 }
  0x39   : > { %p1516_p13 = pneg %p1515_p12 }
  0x3b   : > { %p1523_p7 = pnand %p1522_p3, %p1516_p13 }
  0x3d   : > { %1526 = shalt.err (!%p1523_p7)
}
  0x3e   : > { %1357 = dma.hbm_to_vmem [thread:$0]  (!%p1791_p8), %s2080_s6, 1024, %s1795_s16, [#allocation10], %s2086_s25, %s2086_s25, %s2087_s26  }
  0x3f   : > { %s1851_s27 = sadd.s32 1, %s1693_s30   ;;  %s35_s14 = sadd.s32 1, %s1689_s29 }
  0x40   : > { %s32_s12 = ssub.s32 %s1693_s30, %s1851_s27  ;;  %p42_p10 = scmp.ne.s32.totalorder %s1689_s29, %s1685_s28 }
  0x41   : > { %p33_p1 = scmp.eq.s32.totalorder %s32_s12, 0  ;;  %p43_p4 = scmp.eq.s32.totalorder %s1693_s30, 0 }
  0x42   : > { %p1367_p5 = scmp.lt.s32.totalorder %s1693_s30, 2  ;;  %s1861_s15 = sand.u32 1, %s1689_s29  }
  0x43   : > { %s1864_s17 = scalar_select %p33_p1, %s1689_s29, %s35_s14  }
  0x44   : > { %p44_p6 = por %p43_p4, %p42_p10  ;;  %s1153_s18 = sshll.u32 %s1861_s15, 4 }
  0x45   : > { %s1227_s19 = sshll.u32 %s1693_s30, 8  ;;  %s2092_s0 = sld [smem:[#allocation20_spill]] }
  0x46   : > { %s284_s22 = scalar_lea.vmem [#allocation3], %s1153_s18  ;;  %p1873_p8 = pnand %p1367_p5, %p44_p6 }
  0x47   : > { %s292_s13 = sshll.u32 %s284_s22, 4  ;;  %s1156_s24 = sshll.u32 %s1861_s15, 8  ;;  %s1877_s13 = int_to_ptr.vmem [resolvable:$true] %s292_s13 }
  0x48   : > { %s281_s14 = scalar_lea.sflag [#allocation4], %s1861_s15  ;;  %p1529_p11 = pneg %p1873_p8 }
  0x4b   : > { %s1871_s21 = scalar_lea.hbm %s2092_s0, %s1227_s19  ;;  %s1532_s16 = scalar_lea.hbm %s2092_s0, 512 }
  0x4c   : > { %s1527_s12 = scalar_lea.hbm %s1871_s21, 256  ;;  %p1533_p0 = scmp.lt.u32.totalorder %s1871_s21, %s2092_s0 }
  0x4d   : > { %p1528_p9 = scmp.ne.s32.totalorder %s1871_s21, %s1527_s12  ;;  %p1534_p2 = scmp.lt.u32.totalorder %s1532_s16, %s1527_s12 }
  0x4e   : > { %p1536_p7 = scmp.lt.u32.totalorder %s1527_s12, %s1871_s21 }
  0x4f   : > { %p1530_p12 = pnand %p1529_p11, %p1528_p9  ;;  %p1535_p3 = por %p1534_p2, %p1533_p0 }
  0x51   : > { %p1531_p13 = pneg %p1530_p12  ;;  %p1537_p10 = por %p1536_p7, %p1535_p3 }
  0x53   : > { %p1538_p1 = pnand %p1537_p10, %p1531_p13 }
  0x55   : > { %1541 = shalt.err (!%p1538_p1)
}
  0x56   : > { %s1542_s25 = scalar_lea.vmem %s1877_s13, 256  ;;  %s1699_s18 = smov [#allocation3]  }
  0x57   : > { %p1543_p4 = scmp.ne.s32.totalorder %s1877_s13, %s1542_s25  ;;  %s1547_s19 = sshll.u32 %s1699_s18, 4  ;;  %s1548_s19 = int_to_ptr.vmem [resolvable:$false] %s1547_s19 }
  0x58   : > { %s1549_s20 = scalar_lea.vmem %s1548_s19, 512  ;;  %p1550_p9 = scmp.lt.s32.totalorder %s1877_s13, %s1548_s19 }
  0x59   : > { %p1545_p5 = pnand %p1543_p4, %p1529_p11  ;;  %p1551_p12 = scmp.lt.s32.totalorder %s1549_s20, %s1542_s25 }
  0x5b   : > { %p1546_p6 = pneg %p1545_p5  ;;  %p1552_p0 = por %p1551_p12, %p1550_p9 }
  0x5d   : > { %p1553_p2 = pnand %p1552_p0, %p1546_p6 }
  0x5f   : > { %1556 = shalt.err (!%p1553_p2)
}
  0x60   : > { %1361 = dma.hbm_to_vmem [thread:$0]  (!%p1873_p8), %s1871_s21, 256, %s1877_s13, %s281_s14  }
  0x61   : > { %s303_s12 = scalar_lea.vmem [#allocation6], %s1156_s24  ;;  %s299_s22 = sand.u32 1, %s1693_s30  }
  0x62   : > { %s310_s16 = sshll.u32 %s303_s12, 4  ;;  %s1228_s18 = sshll.u32 %s1693_s30, 12  ;;  %s1909_s16 = int_to_ptr.vmem [resolvable:$true] %s310_s16 }
  0x63   : > { %s1915_s20 = scalar_lea.hbm %s2075_s1, %s1228_s18  ;;  %s1917_s26 = scalar_lea.sflag [#allocation7], %s299_s22 }
  0x64   : > { %s1557_s0 = scalar_lea.hbm %s1915_s20, 4096  ;;  %s1562_s30 = scalar_lea.hbm %s2075_s1, 8192 }
  0x65   : > { %p1558_p13 = scmp.ne.s32.totalorder %s1915_s20, %s1557_s0  ;;  %p1563_p10 = scmp.lt.u32.totalorder %s1915_s20, %s2075_s1 }
  0x66   : > { %p1564_p1 = scmp.lt.u32.totalorder %s1562_s30, %s1557_s0  ;;  %p1566_p5 = scmp.lt.u32.totalorder %s1557_s0, %s1915_s20 }
  0x67   : > { %p1560_p3 = pnand %p1558_p13, %p1529_p11 }
  0x68   : > { %p1565_p4 = por %p1564_p1, %p1563_p10 }
  0x69   : > { %p1561_p7 = pneg %p1560_p3 }
  0x6a   : > { %p1567_p6 = por %p1566_p5, %p1565_p4 }
  0x6c   : > { %p1568_p9 = pnand %p1567_p6, %p1561_p7 }
  0x6e   : > { %1571 = shalt.err (!%p1568_p9)
}
  0x6f   : > { %s1572_s14 = scalar_lea.vmem %s1909_s16, 4096  ;;  %s1700_s12 = smov [#allocation6]  }
  0x70   : > { %p1573_p12 = scmp.ne.s32.totalorder %s1909_s16, %s1572_s14  ;;  %s1577_s22 = sshll.u32 %s1700_s12, 4  ;;  %s1578_s22 = int_to_ptr.vmem [resolvable:$false] %s1577_s22 }
  0x71   : > { %s1579_s18 = scalar_lea.vmem %s1578_s22, 8192  ;;  %p1580_p13 = scmp.lt.s32.totalorder %s1909_s16, %s1578_s22 }
  0x72   : > { %p1575_p0 = pnand %p1573_p12, %p1529_p11  ;;  %p1581_p3 = scmp.lt.s32.totalorder %s1579_s18, %s1572_s14 }
  0x74   : > { %p1576_p2 = pneg %p1575_p0  ;;  %p1582_p10 = por %p1581_p3, %p1580_p13 }
  0x76   : > { %p1583_p1 = pnand %p1582_p10, %p1576_p2 }
  0x78   : > { %1586 = shalt.err (!%p1583_p1)
}
  0x79   : > { %s2094_s0 = smov 4   ;;  %s2095_s25 = smov 64  }
  0x7a   : > { %1364 = dma.hbm_to_vmem [thread:$0]  (!%p1873_p8), %s1915_s20, 4096, %s1909_s16, %s1917_s26, %s2095_s25, %s2095_s25, %s2094_s0  }
  0x7b   : > { %p2096_p11 = scmp.ne.s32.totalorder %s2090_s11, 0 }
  0x7c   : > { %s324_s19 = sand.u32 (!%p2096_p11), 1, %s1685_s28   ;;  %p2097_p7 = scmp.ne.s32.totalorder (!%p2096_p11), %s2089_s10, 0 }
  0x7d   : > { %322 = sbr.rel (%p2096_p11) target bundleno = 969 (0x3c9), region = 48  ;;  %s1160_s15 = sshll.u32 (!%p2096_p11), %s324_s19, 4 }
  0x7e   : > { %s325_s21 = scalar_lea.sflag (!%p2096_p11), [#allocation4], %s324_s19  ;;  %s1949_s30 = scalar_lea.vmem (!%p2096_p11), [#allocation3], %s1160_s15 }
  0x84   : > { %1656 = dma.done.wait (%p2097_p7), %s325_s21, 256  }
  0x85   : > { %1658 = vsyncadd (%p2097_p7), %s325_s21, 4294967040  ;;  %s333_s23 = sand.u32 1, %s1770_s9   ;;  %s1161_s13 = sshll.u32 %s324_s19, 8 }
  0x86   : > { %s334_s26 = scalar_lea.sflag [#allocation7], %s333_s23  ;;  %s1956_s16 = scalar_lea.vmem [#allocation6], %s1161_s13 }
  0x87   : > { %1660 = dma.done.wait (%p2097_p7), %s334_s26, 4096  }
  0x88   : > { %1662 = vsyncadd (%p2097_p7), %s334_s26, 4294963200  ;;  %p2098_p8 = scmp.eq.s32.totalorder %s1770_s9, 0 }
  0x8a   : > { %1664 = dma.done.wait (%p2098_p8), [#allocation7], 1024   ;;  %p2099_p4 = pmov %p2098_p8 }
  0x8c   : > { %1666 = vsyncadd (%p2099_p4), [#allocation7], 4294966272  ;;  %p2100_p5 = pmov %p2099_p4 }
  0x8d   : > { %p2101_p6 = pmov %p2099_p4 }
  0x8e   : > { %1668 = dma.done.wait (%p2100_p5), [#allocation10], 1024  }
  0x8f   : > { %1670 = vsyncadd (%p2101_p6), [#allocation10], 4294966272  ;;  %p2102_p9 = scmp.ne.s32.totalorder %s1770_s9, 0 }
  0x90   : > { %v1701_v0 = vmov (!%p2102_p9), 0.0  }
  0x91   : > { %384 = sbr.rel (%p2102_p9) target bundleno = 152 (0x98), region = 68  ;;  %385 = vst [vmem:[#allocation2] sm:$0xff] (!%p2102_p9), %v1701_v0 }
  0x98 PF: > { %v1415_v1 = vld [vmem:[%s1956_s16 + $0x40] sm:$0xff]   ;;  %v1419_v5 = vld [vmem:[%s1956_s16 + $0x48] sm:$0xff]   ;;  %v1423_v9 = vld [vmem:[%s1956_s16 + $0x50] sm:$0xff]   ;;  %p1201_p12 = scmp.ne.s32.totalorder %s1770_s9, 1 }
  0x99   : > { %v1416_v2 = vld [vmem:[%s1956_s16 + $0xc0] sm:$0xff]   ;;  %1229 = vmatprep.subr.bf16.mxu0 %v1415_v1  ;;  %v1420_v6 = vld [vmem:[%s1956_s16 + $0xc8] sm:$0xff]   ;;  %v1424_v10 = vld [vmem:[%s1956_s16 + $0xd0] sm:$0xff]   ;;  %v1702_v53 = vmov (!%p1201_p12), 0.0   ;;  %vm1703_vm0 = vmmov (!%p1201_p12), 0  }
  0x9a   : > { %v1417_v3 = vld [vmem:[%s1956_s16] sm:$0xff]   ;;  %1251 = vmatprep.subr.bf16.mxu1 %v1416_v2  ;;  %v1421_v7 = vld [vmem:[%s1956_s16 + $0x8] sm:$0xff]   ;;  %v1425_v11 = vld [vmem:[%s1956_s16 + $0x10] sm:$0xff]  }
  0x9b   : > { %v1418_v4 = vld [vmem:[%s1956_s16 + $0x80] sm:$0xff]   ;;  %1230 = vmatpush3.bf16.msra.mxu0 %v1417_v3  ;;  %v1422_v8 = vld [vmem:[%s1956_s16 + $0x88] sm:$0xff]   ;;  %v1426_v12 = vld [vmem:[%s1956_s16 + $0x90] sm:$0xff]  }
  0x9c   : > { %1252 = vmatpush3.bf16.msra.mxu1 %v1418_v4  ;;  %1231 = vmatprep.subr.bf16.mxu0 %v1419_v5  ;;  %v1427_v13 = vld [vmem:[%s1956_s16 + $0x58] sm:$0xff]   ;;  %v1431_v17 = vld [vmem:[%s1956_s16 + $0x60] sm:$0xff]   ;;  %v1435_v21 = vld [vmem:[%s1956_s16 + $0x68] sm:$0xff]  }
  0x9d   : > { %1253 = vmatprep.subr.bf16.mxu1 %v1420_v6  ;;  %v1428_v14 = vld [vmem:[%s1956_s16 + $0xd8] sm:$0xff]   ;;  %v1432_v18 = vld [vmem:[%s1956_s16 + $0xe0] sm:$0xff]   ;;  %v1436_v22 = vld [vmem:[%s1956_s16 + $0xe8] sm:$0xff]  }
  0x9e   : > { %v1429_v15 = vld [vmem:[%s1956_s16 + $0x18] sm:$0xff]   ;;  %v1433_v19 = vld [vmem:[%s1956_s16 + $0x20] sm:$0xff]   ;;  %v1437_v23 = vld [vmem:[%s1956_s16 + $0x28] sm:$0xff]  }
  0x9f   : > { %1232 = vmatpush3.bf16.msra.mxu0 %v1421_v7  ;;  %v1430_v16 = vld [vmem:[%s1956_s16 + $0x98] sm:$0xff]   ;;  %v1434_v20 = vld [vmem:[%s1956_s16 + $0xa0] sm:$0xff]   ;;  %v1438_v24 = vld [vmem:[%s1956_s16 + $0xa8] sm:$0xff]  }
  0xa0   : > { %1254 = vmatpush3.bf16.msra.mxu1 %v1422_v8  ;;  %1233 = vmatprep.subr.bf16.mxu0 %v1423_v9  ;;  %v1439_v25 = vld [vmem:[%s1956_s16 + $0x70] sm:$0xff]   ;;  %v1443_v29 = vld [vmem:[%s1956_s16 + $0x78] sm:$0xff]   ;;  %v1451_v52 = vld [vmem:[#allocation8] sm:$0xff] (!%p1201_p12)  }
  0xa1   : > { %1255 = vmatprep.subr.bf16.mxu1 %v1424_v10  ;;  %v1440_v26 = vld [vmem:[%s1956_s16 + $0xf0] sm:$0xff]   ;;  %v1444_v30 = vld [vmem:[%s1956_s16 + $0xf8] sm:$0xff]   ;;  %v1452_v54 = vld [vmem:[#allocation8 + $0x8] sm:$0xff] (!%p1201_p12)  }
  0xa2   : > { %v1441_v27 = vld [vmem:[%s1956_s16 + $0x30] sm:$0xff]   ;;  %v1445_v31 = vld [vmem:[%s1956_s16 + $0x38] sm:$0xff]   ;;  %v1455_v60 = vld [vmem:[#allocation8 + $0x20] sm:$0xff] (!%p1201_p12)  }
  0xa3   : > { %1234 = vmatpush3.bf16.msra.mxu0 %v1425_v11  ;;  %v1442_v28 = vld [vmem:[%s1956_s16 + $0xb0] sm:$0xff]   ;;  %v1446_v32 = vld [vmem:[%s1956_s16 + $0xb8] sm:$0xff]   ;;  %v1456_v61 = vld [vmem:[#allocation8 + $0x28] sm:$0xff] (!%p1201_p12)  }
  0xa4   : > { %1256 = vmatpush3.bf16.msra.mxu1 %v1426_v12  ;;  %1235 = vmatprep.subr.bf16.mxu0 %v1427_v13  ;;  %v387_v33 = vld [vmem:[%s1949_s30] sm:$0xff]  ;;  %v388_v34 = vld [vmem:[%s1949_s30 + $0x8] sm:$0xff] }
  0xa5   : > { %1257 = vmatprep.subr.bf16.mxu1 %v1428_v14  ;;  %v1165_v35 = vcombine.low %v387_v33, %v387_v33  ;;  %v1166_v36 = vcombine.high %v387_v33, %v387_v33  ;;  %v1167_v37 = vcombine.low %v388_v34, %v388_v34  ;;  %v1168_v38 = vcombine.high %v388_v34, %v388_v34  ;;  %v386_v47 = vld [vmem:[#allocation2] sm:$0xff]  ;;  %v1453_v55 = vld [vmem:[#allocation8 + $0x10] sm:$0xff] (!%p1201_p12)   ;;  %v1459_v1 = vld [vmem:[#allocation9] sm:$0xff] (!%p1201_p12)  }
  0xa6   : > { %v1454_v56 = vld [vmem:[#allocation8 + $0x18] sm:$0xff] (!%p1201_p12)   ;;  %v1457_v62 = vld [vmem:[#allocation8 + $0x30] sm:$0xff] (!%p1201_p12)   ;;  %v1460_v2 = vld [vmem:[#allocation9 + $0x8] sm:$0xff] (!%p1201_p12)  }
  0xa7   : > { %1236 = vmatpush3.bf16.msra.mxu0 %v1429_v15  ;;  %691 = vmatprep.mubr.bf16.mxu0 %v1166_v36  ;;  %v1202_v58 = vld [vmem:[%s2076_s2] ss:$0 sm:$0xff] (!%p1201_p12)  ;;  %v1461_v3 = vld [vmem:[#allocation9 + $0x10] sm:$0xff] (!%p1201_p12)   ;;  %v1463_v5 = vld [vmem:[#allocation9 + $0x20] sm:$0xff] (!%p1201_p12)  }
  0xa8   : > { %1258 = vmatpush3.bf16.msra.mxu1 %v1430_v16  ;;  %1237 = vmatprep.subr.bf16.mxu0 %v1431_v17  ;;  %v1458_v63 = vld [vmem:[#allocation8 + $0x38] sm:$0xff] (!%p1201_p12)   ;;  %v1464_v6 = vld [vmem:[#allocation9 + $0x28] sm:$0xff] (!%p1201_p12)   ;;  %v1465_v7 = vld [vmem:[#allocation9 + $0x30] sm:$0xff] (!%p1201_p12)  }
  0xa9   : > { %1259 = vmatprep.subr.bf16.mxu1 %v1432_v18  ;;  %731 = vmatprep.mubr.bf16.mxu1 %v1168_v38  ;;  %v1462_v4 = vld [vmem:[#allocation9 + $0x18] sm:$0xff] (!%p1201_p12)  }
  0xaa   : > { %v1466_v8 = vld [vmem:[#allocation9 + $0x38] sm:$0xff] (!%p1201_p12)  }
  0xab   : > { %1238 = vmatpush3.bf16.msra.mxu0 %v1433_v19  ;;  %v1211_v34 = vld [vmem:[%s2078_s4] ss:$0 sm:$0xff] (!%p1201_p12) }
  0xac   : > { %1260 = vmatpush3.bf16.msra.mxu1 %v1434_v20  ;;  %1239 = vmatprep.subr.bf16.mxu0 %v1435_v21  ;;  %v1212_v36 = vld [vmem:[%s2079_s5] ss:$0 sm:$0xff] (!%p1201_p12) }
  0xad   : > { %1261 = vmatprep.subr.bf16.mxu1 %v1436_v22 }
  0xaf   : > { %1240 = vmatpush3.bf16.msra.mxu0 %v1437_v23 }
  0xb0   : > { %1262 = vmatpush3.bf16.msra.mxu1 %v1438_v24  ;;  %1241 = vmatprep.subr.bf16.mxu0 %v1439_v25 }
  0xb1   : > { %1263 = vmatprep.subr.bf16.mxu1 %v1440_v26 }
  0xb3   : > { %1242 = vmatpush3.bf16.msra.mxu0 %v1441_v27 }
  0xb4   : > { %1264 = vmatpush3.bf16.msra.mxu1 %v1442_v28  ;;  %1243 = vmatprep.subr.bf16.mxu0 %v1443_v29 }
  0xb5   : > { %1265 = vmatprep.subr.bf16.mxu1 %v1444_v30 }
  0xb7   : > { %1244 = vmatpush3.bf16.msra.mxu0 %v1445_v31 }
  0xb8   : > { %1266 = vmatpush3.bf16.msra.mxu1 %v1446_v32  ;;  %1291 = vmatprep.subr.bf16.mxu0 (!%p1201_p12), %v1702_v53 }
  0xb9   : > { %1311 = vmatprep.subr.bf16.mxu1 (!%p1201_p12), %v1702_v53 }
  0xba   : > { %692 = vmatmul.mubr.bf16.vlgmr.msra.gmra.mrb[0].mxu0 %v1165_v35 }
  0xbb   : > { %732 = vmatmul.mubr.bf16.vlgmr.msra.gmra.mrb[0].mxu1 %v1167_v37  ;;  %1292 = vmatpush3.bf16.msra.mxu0 (!%p1201_p12), %v1451_v52 }
  0xbc   : > { %1307 = vmatprep.mubr.msk.bf16.mxu0 (!%p1201_p12), %vm1703_vm0, %v1702_v53  ;;  %1293 = vmatprep.subr.bf16.mxu0 (!%p1201_p12), %v1702_v53 }
  0xbd   : > { %1327 = vmatprep.mubr.msk.bf16.mxu1 (!%p1201_p12), %vm1703_vm0, %v1702_v53  ;;  %1312 = vmatpush3.bf16.msra.mxu1 (!%p1201_p12), %v1459_v1 }
  0xbe   : > { %1313 = vmatprep.subr.bf16.mxu1 (!%p1201_p12), %v1702_v53 }
  0xbf   : > { %1294 = vmatpush3.bf16.msra.mxu0 (!%p1201_p12), %v1452_v54 }
  0xc0   : > { %1295 = vmatprep.subr.bf16.mxu0 (!%p1201_p12), %v1702_v53 }
  0xc1   : > { %1314 = vmatpush3.bf16.msra.mxu1 (!%p1201_p12), %v1460_v2 }
  0xc2   : > { %1315 = vmatprep.subr.bf16.mxu1 (!%p1201_p12), %v1702_v53 }
  0xc3   : > { %1296 = vmatpush3.bf16.msra.mxu0 (!%p1201_p12), %v1453_v55 }
  0xc4   : > { %1297 = vmatprep.subr.bf16.mxu0 (!%p1201_p12), %v1702_v53 }
  0xc5   : > { %1316 = vmatpush3.bf16.msra.mxu1 (!%p1201_p12), %v1461_v3 }
  0xc6   : > { %1317 = vmatprep.subr.bf16.mxu1 (!%p1201_p12), %v1702_v53 }
  0xc7   : > { %1298 = vmatpush3.bf16.msra.mxu0 (!%p1201_p12), %v1454_v56 }
  0xc8   : > { %1299 = vmatprep.subr.bf16.mxu0 (!%p1201_p12), %v1702_v53 }
  0xc9   : > { %1318 = vmatpush3.bf16.msra.mxu1 (!%p1201_p12), %v1462_v4 }
  0xca   : > { %1319 = vmatprep.subr.bf16.mxu1 (!%p1201_p12), %v1702_v53 }
  0xcb   : > { %1300 = vmatpush3.bf16.msra.mxu0 (!%p1201_p12), %v1455_v60 }
  0xcc   : > { %1301 = vmatprep.subr.bf16.mxu0 (!%p1201_p12), %v1702_v53 }
  0xcd   : > { %1320 = vmatpush3.bf16.msra.mxu1 (!%p1201_p12), %v1463_v5 }
  0xce   : > { %1321 = vmatprep.subr.bf16.mxu1 (!%p1201_p12), %v1702_v53 }
  0xcf   : > { %1302 = vmatpush3.bf16.msra.mxu0 (!%p1201_p12), %v1456_v61 }
  0xd0   : > { %1303 = vmatprep.subr.bf16.mxu0 (!%p1201_p12), %v1702_v53 }
  0xd1   : > { %1322 = vmatpush3.bf16.msra.mxu1 (!%p1201_p12), %v1464_v6 }
  0xd2   : > { %1323 = vmatprep.subr.bf16.mxu1 (!%p1201_p12), %v1702_v53 }
  0xd3   : > { %1304 = vmatpush3.bf16.msra.mxu0 (!%p1201_p12), %v1457_v62 }
  0xd4   : > { %1305 = vmatprep.subr.bf16.mxu0 (!%p1201_p12), %v1702_v53 }
  0xd5   : > { %1324 = vmatpush3.bf16.msra.mxu1 (!%p1201_p12), %v1465_v7 }
  0xd6   : > { %1325 = vmatprep.subr.bf16.mxu1 (!%p1201_p12), %v1702_v53 }
  0xd7   : > { %1306 = vmatpush3.bf16.msra.mxu0 (!%p1201_p12), %v1458_v63 }
  0xd9   : > { %1326 = vmatpush3.bf16.msra.mxu1 (!%p1201_p12), %v1466_v8 }
 0x18d   : > { %v1245_v39 = vpop.f32.mrb[0].mxu0 }
 0x18e   : > { %v1267_v40 = vpop.f32.mrb[0].mxu1  ;;  %v1246_v41 = vpop.f32.mrb[1].mxu0 }
 0x18f   : > { %v1268_v42 = vpop.f32.mrb[1].mxu1  ;;  %v1247_v43 = vadd.f32 %v1246_v41, %v1245_v39  ;;  %v1248_v45 = vpop.f32.mrb[2].mxu0 }
 0x190   : > { %v1269_v44 = vadd.f32 %v1268_v42, %v1267_v40  ;;  %v1270_v46 = vpop.f32.mrb[2].mxu1  ;;  %v1249_v48 = vpop.f32.mrb[3].mxu0  ;;  %744 = sbr.rel (%p1201_p12) target bundleno = 921 (0x399), region = 72 }
 0x191   : > { %v1271_v49 = vpop.f32.mrb[3].mxu1 }
 0x192   : > { %v734_v50 = vadd.f32 %v1269_v44, %v1247_v43 }
 0x194   : > { %v739_v51 = vadd.f32 %v734_v50, %v386_v47 }
 0x196   : > { %740 = vst [vmem:[#allocation2] sm:$0xff] %v739_v51 }
 0x19d   : > { %v745_v57 = vld [vmem:[#allocation2] sm:$0xff] }
 0x19e   : > { %v753_v59 = vadd.f32 %v1202_v58, %v745_v57 }
 0x1a0   : > { %754 = vst [vmem:[#allocation12] sm:$0xff] %v753_v59  ;;  %v755_v0 = vpack.c.bf16 %v753_v59, %v753_v59 }
 0x1a2   : > { %1308 = vmatmul.mubr.bf16.vlgmr.msra.gmra.mrb[0].mxu0 %v755_v0 }
 0x275   : > { %v854_v9 = vpop.f32.mrb[0].mxu0 }
 0x276   : > { %v860_v10 = vrot.slane %v854_v9, 4  ;;  %v866_v11 = vmul.f32 %v854_v9, %v854_v9  ;;  %v1309_v12 = vpop.f32.mrb[1].mxu0 }
 0x277   : > { %v857_v13 = vpop.f32.mrb[2].mxu0 }
 0x278   : > { %v861_v14 = vadd.f32 %v860_v10, %v854_v9  ;;  %v867_v15 = vrot.slane %v866_v11, 4  ;;  %v1310_v16 = vpop.f32.mrb[3].mxu0 }
 0x27a   : > { %v862_v17 = vrot.slane %v861_v14, 2  ;;  %v868_v18 = vadd.f32 %v867_v15, %v866_v11 }
 0x27c   : > { %v863_v19 = vadd.f32 %v862_v17, %v861_v14  ;;  %v869_v20 = vrot.slane %v868_v18, 2 }
 0x27e   : > { %v864_v21 = vrot.slane %v863_v19, 1  ;;  %v870_v22 = vadd.f32 %v869_v20, %v868_v18 }
 0x280   : > { %v865_v23 = vadd.f32 %v864_v21, %v863_v19  ;;  %v871_v24 = vrot.slane %v870_v22, 1 }
 0x282   : > { %v872_v25 = vadd.f32 %v871_v24, %v870_v22  ;;  %v873_v26 = vmul.f32 0.125, %v865_v23 }
 0x284   : > { %v874_v27 = vmul.f32 0.125, %v872_v25  ;;  %v875_v28 = vmul.f32 %v873_v26, %v873_v26  ;;  %v878_v32 = vsub.f32 %v854_v9, %v873_v26 }
 0x286   : > { %v876_v29 = vsub.f32 %v874_v27, %v875_v28 }
 0x288   : > { %v877_v30 = vmax.f32 %v876_v29, 0.0 }
 0x28a   : > { %v879_v31 = vadd.f32 1e-05, %v877_v30 }
 0x28c   : > { %1467 = vrsqrt.f32 %v879_v31 }
 0x296   : > { %v1468_v33 = vpop.eup %1467 }
 0x297   : > { %v881_v35 = vmul.f32 %v1468_v33, %v878_v32 }
 0x299   : > { %v889_v37 = vmul.f32 %v1211_v34, %v881_v35 }
 0x29b   : > { %v897_v38 = vadd.f32 %v1212_v36, %v889_v37 }
 0x29d   : > { %v898_v39 = vmax.f32 %v897_v38, 0.0 }
 0x29f   : > { %v899_v40 = vpack.c.bf16 %v898_v39, %v898_v39 }
 0x2a1   : > { %1328 = vmatmul.mubr.bf16.vlgmr.msra.gmra.mrb[0].mxu1 %v899_v40 }
 0x374   : > { %v998_v41 = vpop.f32.mrb[0].mxu1 }
 0x375   : > { %v1004_v42 = vrot.slane %v998_v41, 4  ;;  %v1010_v43 = vmul.f32 %v998_v41, %v998_v41  ;;  %v1329_v44 = vpop.f32.mrb[1].mxu1 }
 0x376   : > { %v1001_v45 = vpop.f32.mrb[2].mxu1 }
 0x377   : > { %v1005_v46 = vadd.f32 %v1004_v42, %v998_v41  ;;  %v1011_v47 = vrot.slane %v1010_v43, 4  ;;  %v1330_v48 = vpop.f32.mrb[3].mxu1 }
 0x379   : > { %v1006_v49 = vrot.slane %v1005_v46, 2  ;;  %v1012_v50 = vadd.f32 %v1011_v47, %v1010_v43 }
 0x37b   : > { %v1007_v51 = vadd.f32 %v1006_v49, %v1005_v46  ;;  %v1013_v52 = vrot.slane %v1012_v50, 2 }
 0x37d   : > { %v1008_v53 = vrot.slane %v1007_v51, 1  ;;  %v1014_v54 = vadd.f32 %v1013_v52, %v1012_v50 }
 0x37f   : > { %v1009_v55 = vadd.f32 %v1008_v53, %v1007_v51  ;;  %v1015_v56 = vrot.slane %v1014_v54, 1 }
 0x381   : > { %v1016_v57 = vadd.f32 %v1015_v56, %v1014_v54  ;;  %v1017_v58 = vmul.f32 0.125, %v1009_v55 }
 0x383   : > { %v1018_v59 = vmul.f32 0.125, %v1016_v57  ;;  %v1019_v60 = vmul.f32 %v1017_v58, %v1017_v58  ;;  %v1022_v0 = vsub.f32 %v998_v41, %v1017_v58 }
 0x385   : > { %v1020_v61 = vsub.f32 %v1018_v59, %v1019_v60 }
 0x387   : > { %v1021_v62 = vmax.f32 %v1020_v61, 0.0 }
 0x389   : > { %v1023_v63 = vadd.f32 1e-05, %v1021_v62 }
 0x38b   : > { %1469 = vrsqrt.f32 %v1023_v63 }
 0x395   : > { %v1470_v1 = vpop.eup %1469 }
 0x396   : > { %v1025_v2 = vmul.f32 %v1470_v1, %v1022_v0 }
 0x398   : > { %1026 = vst [vmem:[#allocation11] sm:$0xff] %v1025_v2 }
 0x399 PF: > { %p1370_p0 = scmp.eq.s32.totalorder %s1770_s9, 1  ;;  %s1704_s22 = smov [#allocation11]  }
 0x39a   : > { %s1034_s18 = sshll.u32 %s1704_s22, 4  ;;  %s1705_s0 = smov [#allocation12]   ;;  %s1035_s18 = int_to_ptr.vmem [resolvable:$true] %s1034_s18 }
 0x39b   : > { %s1045_s25 = sshll.u32 %s1705_s0, 4  ;;  %s1587_s19 = scalar_lea.vmem %s1035_s18, 128  ;;  %s1046_s25 = int_to_ptr.vmem [resolvable:$true] %s1045_s25 }
 0x39c   : > { %p1588_p2 = scmp.ne.s32.totalorder %s1035_s18, %s1587_s19  ;;  %p1594_p10 = scmp.lt.s32.totalorder %s1035_s18, %s1035_s18 }
 0x39d   : > { %p1595_p1 = scmp.lt.s32.totalorder %s1587_s19, %s1587_s19 }
 0x39e   : > { %p1589_p13 = pnand %p1588_p2, %p1370_p0 }
 0x39f   : > { %p1596_p11 = por %p1595_p1, %p1594_p10 }
 0x3a0   : > { %p1590_p3 = pneg %p1589_p13 }
 0x3a2   : > { %p1597_p7 = pnand %p1596_p11, %p1590_p3 }
 0x3a4   : > { %1600 = shalt.err (!%p1597_p7)
}
 0x3a5   : > { %s1601_s30 = scalar_lea.hbm %s2081_s7, 128 }
 0x3a6   : > { %p1602_p8 = scmp.ne.s32.totalorder %s2081_s7, %s1601_s30  ;;  %p1607_p6 = scmp.lt.u32.totalorder %s1601_s30, %s2081_s7 }
 0x3a8   : > { %p1603_p4 = pnand %p1602_p8, %p1370_p0 }
 0x3aa   : > { %p1604_p5 = pneg %p1603_p4 }
 0x3ac   : > { %p1609_p9 = pnand %p1607_p6, %p1604_p5 }
 0x3ae   : > { %1612 = shalt.err (!%p1609_p9)
}
 0x3af   : > { %1344 = dma.vmem_to_hbm [thread:$0]  (%p1370_p0), %s1035_s18, 128, %s2081_s7, [#allocation5]  }
 0x3b0   : > { %s1613_s20 = scalar_lea.vmem %s1046_s25, 128  ;;  %p1620_p3 = scmp.lt.s32.totalorder %s1046_s25, %s1046_s25 }
 0x3b1   : > { %p1614_p12 = scmp.ne.s32.totalorder %s1046_s25, %s1613_s20  ;;  %p1621_p10 = scmp.lt.s32.totalorder %s1613_s20, %s1613_s20 }
 0x3b3   : > { %p1615_p2 = pnand %p1614_p12, %p1370_p0  ;;  %p1622_p1 = por %p1621_p10, %p1620_p3 }
 0x3b5   : > { %p1616_p13 = pneg %p1615_p2 }
 0x3b7   : > { %p1623_p11 = pnand %p1622_p1, %p1616_p13 }
 0x3b9   : > { %1626 = shalt.err (!%p1623_p11)
}
 0x3ba   : > { %s1627_s12 = scalar_lea.hbm %s2082_s8, 128 }
 0x3bb   : > { %p1628_p7 = scmp.ne.s32.totalorder %s2082_s8, %s1627_s12  ;;  %p1633_p5 = scmp.lt.u32.totalorder %s1627_s12, %s2082_s8 }
 0x3bd   : > { %p1629_p8 = pnand %p1628_p7, %p1370_p0 }
 0x3bf   : > { %p1630_p4 = pneg %p1629_p8 }
 0x3c1   : > { %p1635_p6 = pnand %p1633_p5, %p1630_p4 }
 0x3c3   : > { %1638 = shalt.err (!%p1635_p6)
}
 0x3c4   : > { %1346 = dma.vmem_to_hbm [thread:$0]  (%p1370_p0), %s1046_s25, 128, %s2082_s8, [#allocation13]  }
 0x3c5   : > { %1672 = dma.done.wait (%p1370_p0), [#allocation5], 128  }
 0x3c6   : > { %1674 = vsyncadd (%p1370_p0), [#allocation5], 4294967168 }
 0x3c7   : > { %1676 = dma.done.wait (%p1370_p0), [#allocation13], 128  }
 0x3c8   : > { %1678 = vsyncadd (%p1370_p0), [#allocation13], 4294967168 }
 0x3c9 PF: > { %s2103_s30 = smov %s1851_s27  ;;  %p25_p9 = scmp.ge.s32.totalorder %s1851_s27, 4  }
 0x3ca   : > { %s2104_s27 = smov %s1685_s28  ;;  %s2105_s28 = smov %s1689_s29 }
 0x3cb   : > { %s2106_s29 = smov %s1864_s17  ;;  %27 = sbr.rel (!%p25_p9) target bundleno = 10 (0xa), region = 122 }
 0x3d2   :  { %1062 = vsyncpa [#allocation4], 1 }
 0x3d3   :  { %1064 = vsyncpa [#allocation4 + $0x1], 1 }
 0x3d4   :  { %1065 = vsyncpa [#allocation7], 1 }
 0x3d5   :  { %1067 = vsyncpa [#allocation7 + $0x1], 1 }
 0x3d6   :  { %1068 = vsyncpa [#allocation10], 1 }
 0x3d7   :  { %1069 = vsyncpa [#allocation5], 1 }
 0x3d8   :  { %1071 = vsyncpa [#allocation5 + $0x1], 1 }
 0x3d9   :  { %1072 = vsyncpa [#allocation13], 1 }

</bundles_post_ra>
